<compile_context>
chip_gen: v5e
topology: v5e:2x2
jax: 0.10.0
libtpu: 0.0.40
codegen_flags: <defaults>
</compile_context>

<pallas_src>
import jax
import jax.numpy as jnp
from jax.experimental import pallas as pl
from jax.experimental.pallas import tpu as pltpu

LANE = 128


def _round_up(x, m):
    return (x + m - 1) // m * m


# ----------------------------------------------------------------------------
# Kernel
# ----------------------------------------------------------------------------
def mlp_kernel(x_ref,
               w1_ref, b1_ref,
               w2_ref, b2_ref,
               w3_ref, b3_ref,
               w4_ref, b4_ref,
               w5_ref, b5_ref,
               o_ref):
    """Fused 5-layer MLP forward on one (TM, K_pad) batch tile.

    BatchNorm (eval) is pre-folded into the next Linear, Dropout is identity,
    so hidden layers are relu(x @ W + b).  MXU inputs are bf16; accumulation
    and the bias/ReLU epilogue run in f32.
    """
    h = x_ref[...]                                      # (TM, K_pad), bf16

    def hidden(h, w_ref, b_ref):
        y = jnp.dot(h, w_ref[...], preferred_element_type=jnp.float32)
        y = jnp.maximum(y + b_ref[...], 0.0)            # bias + ReLU in f32
        return y.astype(w_ref.dtype)                    # back to MXU dtype

    h = hidden(h, w1_ref, b1_ref)
    h = hidden(h, w2_ref, b2_ref)
    h = hidden(h, w3_ref, b3_ref)
    h = hidden(h, w4_ref, b4_ref)

    # Final Linear, lane-dense (TM, 128) output; real logit lives in column 0.
    o_ref[...] = (jnp.dot(h, w5_ref[...], preferred_element_type=jnp.float32)
                  + b5_ref[...])


# ----------------------------------------------------------------------------
# Wrapper
# ----------------------------------------------------------------------------
def job_posting_classifier_forward(x, packed_params, *, block_m=1024,
                                   compute_dtype=jnp.bfloat16):
    """x: (B, input_size) f32.  packed_params: flat [W1,b1,...,W5,b5] from
    fold_and_pad_params (W in bf16, padded; b in f32, padded)."""
    B, K = x.shape
    k_pad = packed_params[0].shape[0]
    assert K <= k_pad

    # Batch tile: multiple of 8 sublanes, capped so tiles stay well under the
    # v7x 32 MiB scoped-VMEM budget (per-tile working set ~ TM*256*4B + ~200KB
    # of resident weights, double-buffered only on the x/out tiles).
    tm = min(block_m, _round_up(max(B, 1), 8))
    b_pad = _round_up(B, tm)

    x_p = jnp.zeros((b_pad, k_pad), compute_dtype)
    x_p = x_p.at[:B, :K].set(x.astype(compute_dtype))

    const_map = lambda i: (0, 0)
    weight_specs = [pl.BlockSpec(p.shape, const_map) for p in packed_params]

    out = pl.pallas_call(
        mlp_kernel,
        out_shape=jax.ShapeDtypeStruct((b_pad, LANE), jnp.float32),
        grid=(b_pad // tm,),
        in_specs=[pl.BlockSpec((tm, k_pad), lambda i: (i, 0))] + weight_specs,
        out_specs=pl.BlockSpec((tm, LANE), lambda i: (i, 0)),
        compiler_params=pltpu.CompilerParams(
            dimension_semantics=("parallel",)),
    )(x_p, *packed_params)

    return out[:B, :1]


# ----------------------------------------------------------------------------
# Parameter construction / BN folding / padding (plain-JAX glue)
# ----------------------------------------------------------------------------
def init_raw_params(key, input_size, hidden_sizes=(256, 128, 64, 32)):
    """Deterministic synthetic parameters matching the PyTorch module's shapes."""
    eps = 1e-5
    layers = []
    prev = input_size
    for h in hidden_sizes:
        key, kw, kb, kg, kbe, km, kv = jax.random.split(key, 7)
        bound = 1.0 / jnp.sqrt(prev)
        layers.append(dict(
            W=jax.random.uniform(kw, (prev, h), jnp.float32, -bound, bound),
            b=jax.random.uniform(kb, (h,), jnp.float32, -bound, bound),
            gamma=1.0 + 0.1 * jax.random.normal(kg, (h,), jnp.float32),
            beta=0.1 * jax.random.normal(kbe, (h,), jnp.float32),
            mean=0.1 * jax.random.normal(km, (h,), jnp.float32),
            var=jnp.abs(jax.random.normal(kv, (h,), jnp.float32)) + 0.5,
        ))
        prev = h
    key, kw, kb = jax.random.split(key, 3)
    bound = 1.0 / jnp.sqrt(prev)
    final = dict(W=jax.random.uniform(kw, (prev, 1), jnp.float32, -bound, bound),
                 b=jax.random.uniform(kb, (1,), jnp.float32, -bound, bound))
    return layers, final, eps


def fold_and_pad_params(hidden_layers, final, eps, input_size,
                        compute_dtype=jnp.bfloat16):
    """Fold eval-mode BN of layer k into the Linear of layer k+1 (all in f32),
    then zero-pad every feature dim to a multiple of 128 lanes and cast weights
    to the MXU compute dtype.  Returns flat [W1,b1,...,W5,b5]."""
    eff = []
    s_prev = None
    t_prev = None
    for layer in hidden_layers:
        W, b = layer["W"], layer["b"]
        if s_prev is not None:
            b = b + t_prev @ W                      # b' = b + t_{k-1} @ W  (f32)
            W = s_prev[:, None] * W                 # W' = diag(s_{k-1}) @ W
        eff.append((W, b))
        s = layer["gamma"] / jnp.sqrt(layer["var"] + eps)
        t = layer["beta"] - layer["mean"] * s
        s_prev, t_prev = s, t
    W5, b5 = final["W"], final["b"]
    b5 = b5 + t_prev @ W5
    W5 = s_prev[:, None] * W5
    eff.append((W5, b5))

    packed = []
    in_pad = _round_up(input_size, LANE)
    for W, b in eff:
        out_pad = _round_up(W.shape[1], LANE)
        Wp = jnp.zeros((in_pad, out_pad), jnp.float32)
        Wp = Wp.at[:W.shape[0], :W.shape[1]].set(W)
        bp = jnp.zeros((1, out_pad), jnp.float32)
        bp = bp.at[0, :b.shape[0]].set(b)
        packed.append(Wp.astype(compute_dtype))     # MXU operand -> bf16
        packed.append(bp)                           # bias stays f32 (epilogue)
        in_pad = out_pad
    return packed


# ----------------------------------------------------------------------------
# References
# ----------------------------------------------------------------------------
def reference_forward_f32(x, hidden_layers, final, eps):
    """Pure-JAX f32 reference with the original module semantics (eval mode)."""
    h = x
    for layer in hidden_layers:
        y = jnp.maximum(h @ layer["W"] + layer["b"], 0.0)
        s = layer["gamma"] / jnp.sqrt(layer["var"] + eps)
        t = layer["beta"] - layer["mean"] * s
        h = y * s + t
    return h @ final["W"] + final["b"]


def reference_forward_packed(x, packed, compute_dtype=jnp.bfloat16):
    """Pure-JAX reference using the exact folded/padded/bf16 params the kernel sees."""
    k_pad = packed[0].shape[0]
    h = jnp.zeros((x.shape[0], k_pad), compute_dtype)
    h = h.at[:, :x.shape[1]].set(x.astype(compute_dtype))
    n_layers = len(packed) // 2
    for i in range(n_layers - 1):
        W, b = packed[2 * i], packed[2 * i + 1]
        y = jnp.dot(h, W, preferred_element_type=jnp.float32) + b
        h = jnp.maximum(y, 0.0).astype(compute_dtype)
    W, b = packed[-2], packed[-1]
    out = jnp.dot(h, W, preferred_element_type=jnp.float32) + b
    return out[:, :1]


if __name__ == "__main__":
    key = jax.random.PRNGKey(0)
    key, kx, kp = jax.random.split(key, 3)

    B = 8            # batch
    input_size = 32  # feature dim of the job-posting embedding

    x = jax.random.normal(kx, (B, input_size), jnp.float32)
    hidden_layers, final, eps = init_raw_params(kp, input_size)
    packed = fold_and_pad_params(hidden_layers, final, eps, input_size)

    out = job_posting_classifier_forward(x, packed)
    out = jax.block_until_ready(out)
    assert out.shape == (B, 1), out.shape

    # Tight check vs. a reference using the identical folded/bf16 params.
    ref_packed = reference_forward_packed(x, packed)
    assert jnp.allclose(out, ref_packed, atol=1e-3, rtol=1e-3), (out, ref_packed)

    # Looser check vs. the original-semantics full-f32 reference (bf16 weights drift).
    ref_f32 = reference_forward_f32(x, hidden_layers, final, eps)
    assert jnp.allclose(out, ref_f32, atol=5e-2, rtol=5e-2), (out, ref_f32)

    print("KERNEL_OK")
</pallas_src>

<mosaic_0001>
module attributes {stable_mosaic.version = 11 : i64} {
  func.func @mlp_kernel(%arg0: i32, %arg1: memref<8x128xbf16, #tpu.memory_space<vmem>>, %arg2: memref<128x256xbf16, #tpu.memory_space<vmem>>, %arg3: memref<1x256xf32, #tpu.memory_space<vmem>>, %arg4: memref<256x128xbf16, #tpu.memory_space<vmem>>, %arg5: memref<1x128xf32, #tpu.memory_space<vmem>>, %arg6: memref<128x128xbf16, #tpu.memory_space<vmem>>, %arg7: memref<1x128xf32, #tpu.memory_space<vmem>>, %arg8: memref<128x128xbf16, #tpu.memory_space<vmem>>, %arg9: memref<1x128xf32, #tpu.memory_space<vmem>>, %arg10: memref<128x128xbf16, #tpu.memory_space<vmem>>, %arg11: memref<1x128xf32, #tpu.memory_space<vmem>>, %arg12: memref<8x128xf32, #tpu.memory_space<vmem>>) attributes {dimension_semantics = [#tpu.dimension_semantics<parallel>], iteration_bounds = array<i64: 1>, scalar_prefetch = 0 : i64, scratch_operands = 0 : i64, tpu.core_type = #tpu.core_type<tc>, window_params = [{transform_indices = @transform_0, window_bounds = array<i64: 8, 128>}, {pipeline_mode = #tpu.pipeline_mode<synchronous>, transform_indices = @transform_1, window_bounds = array<i64: 128, 256>}, {pipeline_mode = #tpu.pipeline_mode<synchronous>, transform_indices = @transform_2, window_bounds = array<i64: 1, 256>}, {pipeline_mode = #tpu.pipeline_mode<synchronous>, transform_indices = @transform_3, window_bounds = array<i64: 256, 128>}, {pipeline_mode = #tpu.pipeline_mode<synchronous>, transform_indices = @transform_4, window_bounds = array<i64: 1, 128>}, {pipeline_mode = #tpu.pipeline_mode<synchronous>, transform_indices = @transform_5, window_bounds = array<i64: 128, 128>}, {pipeline_mode = #tpu.pipeline_mode<synchronous>, transform_indices = @transform_6, window_bounds = array<i64: 1, 128>}, {pipeline_mode = #tpu.pipeline_mode<synchronous>, transform_indices = @transform_7, window_bounds = array<i64: 128, 128>}, {pipeline_mode = #tpu.pipeline_mode<synchronous>, transform_indices = @transform_8, window_bounds = array<i64: 1, 128>}, {pipeline_mode = #tpu.pipeline_mode<synchronous>, transform_indices = @transform_9, window_bounds = array<i64: 128, 128>}, {pipeline_mode = #tpu.pipeline_mode<synchronous>, transform_indices = @transform_10, window_bounds = array<i64: 1, 128>}, {transform_indices = @transform_11, window_bounds = array<i64: 8, 128>}]} {
    %c0 = arith.constant 0 : index
    %c0_0 = arith.constant 0 : index
    %0 = vector.load %arg1[%c0, %c0_0] : memref<8x128xbf16, #tpu.memory_space<vmem>>, vector<8x128xbf16>
    %c0_1 = arith.constant 0 : index
    %c0_2 = arith.constant 0 : index
    %1 = vector.load %arg2[%c0_1, %c0_2] : memref<128x256xbf16, #tpu.memory_space<vmem>>, vector<128x256xbf16>
    %cst = arith.constant dense<0.000000e+00> : vector<8x256xf32>
    %2 = tpu.matmul %0, %1, %cst {dimension_numbers = #tpu.dot_dimension_numbers<[1], [0], [0], [1], [0, 0, 1, 1], [], []>} : vector<8x128xbf16>, vector<128x256xbf16>, vector<8x256xf32> -> vector<8x256xf32>
    %c0_3 = arith.constant 0 : index
    %c0_4 = arith.constant 0 : index
    %3 = vector.load %arg3[%c0_3, %c0_4] : memref<1x256xf32, #tpu.memory_space<vmem>>, vector<1x256xf32>
    %4 = vector.broadcast %3 : vector<1x256xf32> to vector<8x256xf32>
    %5 = arith.addf %2, %4 : vector<8x256xf32>
    %cst_5 = arith.constant 0.000000e+00 : f32
    %6 = vector.broadcast %cst_5 : f32 to vector<8x256xf32>
    %7 = arith.maximumf %5, %6 : vector<8x256xf32>
    %8 = arith.truncf %7 : vector<8x256xf32> to vector<8x256xbf16>
    %c0_6 = arith.constant 0 : index
    %c0_7 = arith.constant 0 : index
    %9 = vector.load %arg4[%c0_6, %c0_7] : memref<256x128xbf16, #tpu.memory_space<vmem>>, vector<256x128xbf16>
    %cst_8 = arith.constant dense<0.000000e+00> : vector<8x128xf32>
    %10 = tpu.matmul %8, %9, %cst_8 {dimension_numbers = #tpu.dot_dimension_numbers<[1], [0], [0], [1], [0, 0, 1, 1], [], []>} : vector<8x256xbf16>, vector<256x128xbf16>, vector<8x128xf32> -> vector<8x128xf32>
    %c0_9 = arith.constant 0 : index
    %c0_10 = arith.constant 0 : index
    %11 = vector.load %arg5[%c0_9, %c0_10] : memref<1x128xf32, #tpu.memory_space<vmem>>, vector<1x128xf32>
    %12 = vector.broadcast %11 : vector<1x128xf32> to vector<8x128xf32>
    %13 = arith.addf %10, %12 : vector<8x128xf32>
    %cst_11 = arith.constant 0.000000e+00 : f32
    %14 = vector.broadcast %cst_11 : f32 to vector<8x128xf32>
    %15 = arith.maximumf %13, %14 : vector<8x128xf32>
    %16 = arith.truncf %15 : vector<8x128xf32> to vector<8x128xbf16>
    %c0_12 = arith.constant 0 : index
    %c0_13 = arith.constant 0 : index
    %17 = vector.load %arg6[%c0_12, %c0_13] : memref<128x128xbf16, #tpu.memory_space<vmem>>, vector<128x128xbf16>
    %cst_14 = arith.constant dense<0.000000e+00> : vector<8x128xf32>
    %18 = tpu.matmul %16, %17, %cst_14 {dimension_numbers = #tpu.dot_dimension_numbers<[1], [0], [0], [1], [0, 0, 1, 1], [], []>} : vector<8x128xbf16>, vector<128x128xbf16>, vector<8x128xf32> -> vector<8x128xf32>
    %c0_15 = arith.constant 0 : index
    %c0_16 = arith.constant 0 : index
    %19 = vector.load %arg7[%c0_15, %c0_16] : memref<1x128xf32, #tpu.memory_space<vmem>>, vector<1x128xf32>
    %20 = vector.broadcast %19 : vector<1x128xf32> to vector<8x128xf32>
    %21 = arith.addf %18, %20 : vector<8x128xf32>
    %cst_17 = arith.constant 0.000000e+00 : f32
    %22 = vector.broadcast %cst_17 : f32 to vector<8x128xf32>
    %23 = arith.maximumf %21, %22 : vector<8x128xf32>
    %24 = arith.truncf %23 : vector<8x128xf32> to vector<8x128xbf16>
    %c0_18 = arith.constant 0 : index
    %c0_19 = arith.constant 0 : index
    %25 = vector.load %arg8[%c0_18, %c0_19] : memref<128x128xbf16, #tpu.memory_space<vmem>>, vector<128x128xbf16>
    %cst_20 = arith.constant dense<0.000000e+00> : vector<8x128xf32>
    %26 = tpu.matmul %24, %25, %cst_20 {dimension_numbers = #tpu.dot_dimension_numbers<[1], [0], [0], [1], [0, 0, 1, 1], [], []>} : vector<8x128xbf16>, vector<128x128xbf16>, vector<8x128xf32> -> vector<8x128xf32>
    %c0_21 = arith.constant 0 : index
    %c0_22 = arith.constant 0 : index
    %27 = vector.load %arg9[%c0_21, %c0_22] : memref<1x128xf32, #tpu.memory_space<vmem>>, vector<1x128xf32>
    %28 = vector.broadcast %27 : vector<1x128xf32> to vector<8x128xf32>
    %29 = arith.addf %26, %28 : vector<8x128xf32>
    %cst_23 = arith.constant 0.000000e+00 : f32
    %30 = vector.broadcast %cst_23 : f32 to vector<8x128xf32>
    %31 = arith.maximumf %29, %30 : vector<8x128xf32>
    %32 = arith.truncf %31 : vector<8x128xf32> to vector<8x128xbf16>
    %c0_24 = arith.constant 0 : index
    %c0_25 = arith.constant 0 : index
    %33 = vector.load %arg10[%c0_24, %c0_25] : memref<128x128xbf16, #tpu.memory_space<vmem>>, vector<128x128xbf16>
    %cst_26 = arith.constant dense<0.000000e+00> : vector<8x128xf32>
    %34 = tpu.matmul %32, %33, %cst_26 {dimension_numbers = #tpu.dot_dimension_numbers<[1], [0], [0], [1], [0, 0, 1, 1], [], []>} : vector<8x128xbf16>, vector<128x128xbf16>, vector<8x128xf32> -> vector<8x128xf32>
    %c0_27 = arith.constant 0 : index
    %c0_28 = arith.constant 0 : index
    %35 = vector.load %arg11[%c0_27, %c0_28] : memref<1x128xf32, #tpu.memory_space<vmem>>, vector<1x128xf32>
    %36 = vector.broadcast %35 : vector<1x128xf32> to vector<8x128xf32>
    %37 = arith.addf %34, %36 : vector<8x128xf32>
    %c0_29 = arith.constant 0 : index
    %c0_30 = arith.constant 0 : index
    %38 = vector.load %arg12[%c0_29, %c0_30] : memref<8x128xf32, #tpu.memory_space<vmem>>, vector<8x128xf32>
    tpu.vector_store %arg12[%c0_29, %c0_30], %37 {strides = array<i32>} : memref<8x128xf32, #tpu.memory_space<vmem>>, vector<8x128xf32>,
    return
  }
  func.func @transform_0(%arg0: i32) -> (i32, i32) {
    %c0_i32 = arith.constant 0 : i32
    %c0_i32_0 = arith.constant 0 : i32
    return %arg0, %c0_i32 : i32, i32
  }
  func.func @transform_1(%arg0: i32) -> (i32, i32) {
    %c0_i32 = arith.constant 0 : i32
    %c0_i32_0 = arith.constant 0 : i32
    %c0_i32_1 = arith.constant 0 : i32
    return %c0_i32, %c0_i32_0 : i32, i32
  }
  func.func @transform_2(%arg0: i32) -> (i32, i32) {
    %c0_i32 = arith.constant 0 : i32
    %c0_i32_0 = arith.constant 0 : i32
    %c0_i32_1 = arith.constant 0 : i32
    return %c0_i32, %c0_i32_0 : i32, i32
  }
  func.func @transform_3(%arg0: i32) -> (i32, i32) {
    %c0_i32 = arith.constant 0 : i32
    %c0_i32_0 = arith.constant 0 : i32
    %c0_i32_1 = arith.constant 0 : i32
    return %c0_i32, %c0_i32_0 : i32, i32
  }
  func.func @transform_4(%arg0: i32) -> (i32, i32) {
    %c0_i32 = arith.constant 0 : i32
    %c0_i32_0 = arith.constant 0 : i32
    %c0_i32_1 = arith.constant 0 : i32
    return %c0_i32, %c0_i32_0 : i32, i32
  }
  func.func @transform_5(%arg0: i32) -> (i32, i32) {
    %c0_i32 = arith.constant 0 : i32
    %c0_i32_0 = arith.constant 0 : i32
    %c0_i32_1 = arith.constant 0 : i32
    return %c0_i32, %c0_i32_0 : i32, i32
  }
  func.func @transform_6(%arg0: i32) -> (i32, i32) {
    %c0_i32 = arith.constant 0 : i32
    %c0_i32_0 = arith.constant 0 : i32
    %c0_i32_1 = arith.constant 0 : i32
    return %c0_i32, %c0_i32_0 : i32, i32
  }
  func.func @transform_7(%arg0: i32) -> (i32, i32) {
    %c0_i32 = arith.constant 0 : i32
    %c0_i32_0 = arith.constant 0 : i32
    %c0_i32_1 = arith.constant 0 : i32
    return %c0_i32, %c0_i32_0 : i32, i32
  }
  func.func @transform_8(%arg0: i32) -> (i32, i32) {
    %c0_i32 = arith.constant 0 : i32
    %c0_i32_0 = arith.constant 0 : i32
    %c0_i32_1 = arith.constant 0 : i32
    return %c0_i32, %c0_i32_0 : i32, i32
  }
  func.func @transform_9(%arg0: i32) -> (i32, i32) {
    %c0_i32 = arith.constant 0 : i32
    %c0_i32_0 = arith.constant 0 : i32
    %c0_i32_1 = arith.constant 0 : i32
    return %c0_i32, %c0_i32_0 : i32, i32
  }
  func.func @transform_10(%arg0: i32) -> (i32, i32) {
    %c0_i32 = arith.constant 0 : i32
    %c0_i32_0 = arith.constant 0 : i32
    %c0_i32_1 = arith.constant 0 : i32
    return %c0_i32, %c0_i32_0 : i32, i32
  }
  func.func @transform_11(%arg0: i32) -> (i32, i32) {
    %c0_i32 = arith.constant 0 : i32
    %c0_i32_0 = arith.constant 0 : i32
    return %arg0, %c0_i32 : i32, i32
  }
}

</mosaic_0001>

<bundles_post_ra>
// kernel: tpu_custom_call.1
= control target key start
LH: loop header
LB: loop body
LE: loop exit
PB: predicated region body
PF: predicated region fallthrough
CT: control target
= control target key end

     0   :  { %16 = vsyncpa [#allocation3], 0  ;;  %s1323_s0 = inlined_call_operand.hbm [shape: bf16[8,128], index: 0, kind: input, shape index: {}]   ;;  %s1324_s1 = inlined_call_operand.hbm [shape: bf16[128,256], index: 1, kind: input, shape index: {}]   ;;  %s1325_s2 = inlined_call_operand.hbm [shape: f32[1,256], index: 2, kind: input, shape index: {}]   ;;  %s1326_s3 = inlined_call_operand.hbm [shape: bf16[256,128], index: 3, kind: input, shape index: {}]   ;;  %s1327_s4 = inlined_call_operand.vmem [shape: f32[1,128], index: 4, kind: input, shape index: {}]   ;;  %s1328_s5 = inlined_call_operand.hbm [shape: bf16[128,128], index: 5, kind: input, shape index: {}]   ;;  %s1329_s6 = inlined_call_operand.vmem [shape: f32[1,128], index: 6, kind: input, shape index: {}]   ;;  %s1330_s7 = inlined_call_operand.hbm [shape: bf16[128,128], index: 7, kind: input, shape index: {}]   ;;  %s1331_s8 = inlined_call_operand.vmem [shape: f32[1,128], index: 8, kind: input, shape index: {}]   ;;  %s1332_s9 = inlined_call_operand.hbm [shape: bf16[128,128], index: 9, kind: input, shape index: {}]   ;;  %s1333_s10 = inlined_call_operand.vmem [shape: f32[1,128], index: 10, kind: input, shape index: {}]   ;;  %s1334_s11 = inlined_call_operand.hbm [shape: f32[8,128], index: 11, kind: output, shape index: {}]  }
   0x1   :  { %17 = vsyncpa [#allocation6], 0 }
   0x2   :  { %18 = vsyncpa [#allocation9], 0 }
   0x3   :  { %19 = vsyncpa [#allocation12], 0  ;;  %s36_s19 = sshll.u32 %s1324_s1, 4  ;;  %s37_s19 = int_to_ptr.hbm [resolvable:$true] %s36_s19 }
   0x4   :  { %20 = vsyncpa [#allocation4], 0  ;;  %s1203_s20 = smov [#allocation5]   ;;  %s60_s24 = sshll.u32 %s1326_s3, 4  ;;  %s61_s24 = int_to_ptr.hbm [resolvable:$true] %s60_s24 }
   0x5   :  { %s38_s21 = sshll.u32 %s1203_s20, 4  ;;  %s1204_s25 = smov 128   ;;  %s39_s21 = int_to_ptr.vmem [resolvable:$true] %s38_s21 }
   0x6   :  { %s1205_s26 = smov 8   ;;  %s1206_s27 = smov [#allocation8]  }
   0x7   :  { %44 = dma.hbm_to_vmem [thread:$0]  %s37_s19, 2048, %s39_s21, [#allocation6], %s1204_s25, %s1204_s25, %s1205_s26  }
   0x8   :  { %s62_s28 = sshll.u32 %s1206_s27, 4  ;;  %s1207_s29 = smov 64   ;;  %s63_s28 = int_to_ptr.vmem [resolvable:$true] %s62_s28 }
   0x9   :  { %s1208_s30 = smov 4   ;;  %s90_s13 = sshll.u32 %s1330_s7, 4  ;;  %s91_s13 = int_to_ptr.hbm [resolvable:$true] %s90_s13 }
   0xa   :  { %68 = dma.hbm_to_vmem [thread:$0]  %s61_s24, 2048, %s63_s28, [#allocation9], %s1207_s29, %s1207_s29, %s1208_s30  }
   0xb   :  { %s1209_s14 = smov [#allocation11]   ;;  %s26_s17 = sshll.u32 %s1323_s0, 4  ;;  %s27_s17 = int_to_ptr.hbm [resolvable:$true] %s26_s17 }
   0xc   :  { %s92_s3 = sshll.u32 %s1209_s14, 4  ;;  %s1210_s18 = smov [#allocation2]   ;;  %s93_s3 = int_to_ptr.vmem [resolvable:$true] %s92_s3 }
   0xd   :  { %98 = dma.hbm_to_vmem [thread:$0]  %s91_s13, 1024, %s93_s3, [#allocation12], %s1207_s29, %s1207_s29, %s1208_s30  }
   0xe   :  { %s28_s19 = sshll.u32 %s1210_s18, 4  ;;  %s50_s22 = sshll.u32 %s1325_s2, 4  ;;  %s29_s19 = int_to_ptr.vmem [resolvable:$true] %s28_s19  ;;  %s51_s22 = int_to_ptr.hbm [resolvable:$true] %s50_s22 }
   0xf   :  { %31 = dma.hbm_to_vmem [thread:$0]  %s27_s17, 64, %s29_s19, [#allocation3]  }
  0x10   :  { %s75_s24 = sshll.u32 %s1328_s5, 4  ;;  %s1211_s25 = smov [#allocation7]   ;;  %s76_s24 = int_to_ptr.hbm [resolvable:$true] %s75_s24 }
  0x11   :  { %s52_s0 = sshll.u32 %s1211_s25, 4  ;;  %s1212_s26 = smov [#allocation10]   ;;  %s53_s0 = int_to_ptr.vmem [resolvable:$true] %s52_s0 }
  0x12   :  { %55 = dma.hbm_to_vmem [thread:$0]  %s51_s22, 32, %s53_s0, [#allocation6]  }
  0x13   :  { %s77_s27 = sshll.u32 %s1212_s26, 4  ;;  %s105_s12 = sshll.u32 %s1332_s9, 4  ;;  %s78_s27 = int_to_ptr.vmem [resolvable:$true] %s77_s27  ;;  %s106_s12 = int_to_ptr.hbm [resolvable:$true] %s105_s12 }
  0x14   :  { %83 = dma.hbm_to_vmem [thread:$0]  %s76_s24, 1024, %s78_s27, [#allocation9], %s1207_s29, %s1207_s29, %s1208_s30  }
  0x15   :  { %s1213_s2 = smov [#allocation13]  }
  0x16   :  { %s107_s13 = sshll.u32 %s1213_s2, 4  ;;  %s108_s13 = int_to_ptr.vmem [resolvable:$true] %s107_s13 }
  0x17   :  { %113 = dma.hbm_to_vmem [thread:$0]  %s106_s12, 1024, %s108_s13, [#allocation12], %s1207_s29, %s1207_s29, %s1208_s30  }
  0x18   :  { %1193 = dma.done.wait [#allocation3], 64  }
  0x19   :  { %1194 = vsyncadd [#allocation3], 4294967232 }
  0x1a   :  { %1195 = dma.done.wait [#allocation6], 2080  }
  0x1b   :  { %1196 = vsyncadd [#allocation6], 4294965216 }
  0x1c   :  { %1197 = dma.done.wait [#allocation9], 3072  }
  0x1d   :  { %1198 = vsyncadd [#allocation9], 4294964224 }
  0x1e   :  { %1199 = dma.done.wait [#allocation12], 2048  }
  0x1f   :  { %1200 = vsyncadd [#allocation12], 4294965248  ;;  %v763_v0 = vld [vmem:[#allocation5 + $0x70] sm:$0xf]  ;;  %v944_v1 = vld [vmem:[#allocation5 + $0x74] sm:$0xf0] }
  0x20   :  { %v943_v2 = vld [vmem:[#allocation5 + $0x74] sm:$0xf]  ;;  %v764_v3 = vor.u32 %v944_v1, %v763_v0  ;;  %v765_v4 = vld [vmem:[#allocation5 + $0x78] sm:$0xf0]  ;;  %v755_v5 = vld [vmem:[#allocation5 + $0x60] sm:$0xf] }
  0x21   :  { %v942_v6 = vld [vmem:[#allocation5 + $0x64] sm:$0xf0]  ;;  %v768_v7 = vor.u32 %v943_v2, %v765_v4  ;;  %v941_v8 = vld [vmem:[#allocation5 + $0x64] sm:$0xf]  ;;  %v757_v9 = vld [vmem:[#allocation5 + $0x68] sm:$0xf0] }
  0x22   :  { %247 = vmatpush.bf16.msra.mxu0 %v764_v3  ;;  %v756_v10 = vor.u32 %v942_v6, %v755_v5  ;;  %v760_v11 = vor.u32 %v941_v8, %v757_v9  ;;  %v747_v12 = vld [vmem:[#allocation5 + $0x50] sm:$0xf]  ;;  %v940_v13 = vld [vmem:[#allocation5 + $0x54] sm:$0xf0]  ;;  %v939_v14 = vld [vmem:[#allocation5 + $0x54] sm:$0xf] }
  0x23   :  { %260 = vmatpush.bf16.msra.mxu1 %v768_v7  ;;  %v749_v15 = vld [vmem:[#allocation5 + $0x58] sm:$0xf0]  ;;  %v748_v16 = vor.u32 %v940_v13, %v747_v12  ;;  %v739_v18 = vld [vmem:[#allocation5 + $0x40] sm:$0xf]  ;;  %v938_v19 = vld [vmem:[#allocation5 + $0x44] sm:$0xf0] }
  0x24   :  { %v752_v17 = vor.u32 %v939_v14, %v749_v15  ;;  %v937_v20 = vld [vmem:[#allocation5 + $0x44] sm:$0xf]  ;;  %v741_v21 = vld [vmem:[#allocation5 + $0x48] sm:$0xf0]  ;;  %v740_v22 = vor.u32 %v938_v19, %v739_v18  ;;  %v952_v23 = vld [vmem:[#allocation8 + $0x38] sm:$0xff]  ;;  %s1214_s15 = smov [#allocation14]  }
  0x25   :  { %v960_v24 = vld [vmem:[#allocation8 + $0x78] sm:$0xff]  ;;  %v744_v25 = vor.u32 %v937_v20, %v741_v21  ;;  %v731_v26 = vld [vmem:[#allocation5 + $0x30] sm:$0xf]  ;;  %v935_v28 = vld [vmem:[#allocation5 + $0x34] sm:$0xf]  ;;  %409 = vmatpush.bf16.msra.mxu2 %v952_v23  ;;  %s690_s16 = sshll.u32 %s1214_s15, 4  ;;  %s691_s16 = int_to_ptr.vmem [resolvable:$true] %s690_s16 }
  0x26   :  { %248 = vmatpush.bf16.msra.mxu0 %v756_v10  ;;  %v936_v27 = vld [vmem:[#allocation5 + $0x34] sm:$0xf0]  ;;  %v733_v29 = vld [vmem:[#allocation5 + $0x38] sm:$0xf0]  ;;  %422 = vmatpush.bf16.msra.mxu3 %v960_v24  ;;  %v723_v32 = vld [vmem:[#allocation5 + $0x20] sm:$0xf] }
  0x27   :  { %261 = vmatpush.bf16.msra.mxu1 %v760_v11  ;;  %v951_v30 = vld [vmem:[#allocation8 + $0x30] sm:$0xff]  ;;  %v732_v33 = vor.u32 %v936_v27, %v731_v26  ;;  %v934_v34 = vld [vmem:[#allocation5 + $0x24] sm:$0xf0]  ;;  %v736_v35 = vor.u32 %v935_v28, %v733_v29  ;;  %v933_v36 = vld [vmem:[#allocation5 + $0x24] sm:$0xf]  ;;  %s692_s19 = sshll.u32 %s1334_s11, 4  ;;  %s693_s19 = int_to_ptr.hbm [resolvable:$true] %s692_s19 }
  0x28   :  { %v959_v31 = vld [vmem:[#allocation8 + $0x70] sm:$0xff]  ;;  %v725_v37 = vld [vmem:[#allocation5 + $0x28] sm:$0xf0]  ;;  %v724_v40 = vor.u32 %v934_v34, %v723_v32  ;;  %v717_v45 = vld [vmem:[#allocation5 + $0x18] sm:$0xf0] }
  0x29   :  { %410 = vmatpush.bf16.msra.mxu2 %v951_v30  ;;  %v950_v38 = vld [vmem:[#allocation8 + $0x28] sm:$0xff]  ;;  %v728_v41 = vor.u32 %v933_v36, %v725_v37  ;;  %v932_v43 = vld [vmem:[#allocation5 + $0x14] sm:$0xf0]  ;;  %v931_v44 = vld [vmem:[#allocation5 + $0x14] sm:$0xf] }
  0x2a   :  { %249 = vmatpush.bf16.msra.mxu0 %v748_v16  ;;  %423 = vmatpush.bf16.msra.mxu3 %v959_v31  ;;  %v958_v39 = vld [vmem:[#allocation8 + $0x68] sm:$0xff]  ;;  %v949_v46 = vld [vmem:[#allocation8 + $0x20] sm:$0xff]  ;;  %v720_v49 = vor.u32 %v931_v44, %v717_v45  ;;  %v948_v54 = vld [vmem:[#allocation8 + $0x18] sm:$0xff] }
  0x2b   :  { %262 = vmatpush.bf16.msra.mxu1 %v752_v17  ;;  %v715_v42 = vld [vmem:[#allocation5 + $0x10] sm:$0xf]  ;;  %v957_v47 = vld [vmem:[#allocation8 + $0x60] sm:$0xff]  ;;  %v709_v53 = vld [vmem:[#allocation5 + $0x8] sm:$0xf0] }
  0x2c   :  { %v716_v48 = vor.u32 %v932_v43, %v715_v42  ;;  %v707_v50 = vld [vmem:[#allocation5] sm:$0xf]  ;;  %v930_v51 = vld [vmem:[#allocation5 + $0x4] sm:$0xf0]  ;;  %v929_v52 = vld [vmem:[#allocation5 + $0x4] sm:$0xf] }
  0x2d   :  { %411 = vmatpush.bf16.msra.mxu2 %v950_v38  ;;  %v956_v55 = vld [vmem:[#allocation8 + $0x58] sm:$0xff]  ;;  %v708_v56 = vor.u32 %v930_v51, %v707_v50  ;;  %v712_v57 = vor.u32 %v929_v52, %v709_v53  ;;  %v947_v58 = vld [vmem:[#allocation8 + $0x10] sm:$0xff]  ;;  %v946_v61 = vld [vmem:[#allocation8 + $0x8] sm:$0xff] }
  0x2e   :  { %250 = vmatpush.bf16.msra.mxu0 %v740_v22  ;;  %424 = vmatpush.bf16.msra.mxu3 %v958_v39  ;;  %v955_v59 = vld [vmem:[#allocation8 + $0x50] sm:$0xff]  ;;  %v144_v60 = vld [vmem:[#allocation2] sm:$0xf]  ;;  %v954_v62 = vld [vmem:[#allocation8 + $0x48] sm:$0xff] }
  0x2f   :  { %263 = vmatpush.bf16.msra.mxu1 %v744_v25  ;;  %v945_v63 = vld [vmem:[#allocation8] sm:$0xff]  ;;  %v968_v1 = vld [vmem:[#allocation10 + $0x38] sm:$0xff]  ;;  %v967_v2 = vld [vmem:[#allocation10 + $0x30] sm:$0xff] }
  0x30   :  { %v953_v0 = vld [vmem:[#allocation8 + $0x40] sm:$0xff]  ;;  %v966_v3 = vld [vmem:[#allocation10 + $0x28] sm:$0xff]  ;;  %v964_v5 = vld [vmem:[#allocation10 + $0x18] sm:$0xff] }
  0x31   :  { %412 = vmatpush.bf16.msra.mxu2 %v949_v46  ;;  %v965_v4 = vld [vmem:[#allocation10 + $0x20] sm:$0xff]  ;;  %v161_v6 = vld [vmem:[#allocation7] sm:$0x3]  ;;  %v963_v7 = vld [vmem:[#allocation10 + $0x10] sm:$0xff] }
  0x32   :  { %251 = vmatpush.bf16.msra.mxu0 %v732_v33  ;;  %425 = vmatpush.bf16.msra.mxu3 %v957_v47  ;;  %v163_v8 = vperm.slane %v161_v6, 0  ;;  %v164_v9 = vperm.slane %v161_v6, 1  ;;  %v962_v20 = vld [vmem:[#allocation10 + $0x8] sm:$0xff]  ;;  %v961_v21 = vld [vmem:[#allocation10] sm:$0xff]  ;;  %v976_v22 = vld [vmem:[#allocation11 + $0x38] sm:$0xff] }
  0x33   :  { %264 = vmatpush.bf16.msra.mxu1 %v736_v35  ;;  %v975_v23 = vld [vmem:[#allocation11 + $0x30] sm:$0xff]  ;;  %v974_v24 = vld [vmem:[#allocation11 + $0x28] sm:$0xff]  ;;  %v973_v25 = vld [vmem:[#allocation11 + $0x20] sm:$0xff] }
  0x34   :  { %v972_v26 = vld [vmem:[#allocation11 + $0x18] sm:$0xff]  ;;  %v971_v27 = vld [vmem:[#allocation11 + $0x10] sm:$0xff]  ;;  %v970_v37 = vld [vmem:[#allocation11 + $0x8] sm:$0xff] }
  0x35   :  { %413 = vmatpush.bf16.msra.mxu2 %v948_v54  ;;  %v997_v28 = vld [vmem:[%s1327_s4] ss:$0 sm:$0xff]  ;;  %v969_v38 = vld [vmem:[#allocation11] sm:$0xff]  ;;  %v979_v44 = vld [vmem:[#allocation13 + $0x10] sm:$0xff] }
  0x36   :  { %252 = vmatpush.bf16.msra.mxu0 %v724_v40  ;;  %426 = vmatpush.bf16.msra.mxu3 %v956_v55  ;;  %v984_v39 = vld [vmem:[#allocation13 + $0x38] sm:$0xff]  ;;  %v983_v40 = vld [vmem:[#allocation13 + $0x30] sm:$0xff]  ;;  %v981_v42 = vld [vmem:[#allocation13 + $0x20] sm:$0xff] }
  0x37   :  { %265 = vmatpush.bf16.msra.mxu1 %v728_v41  ;;  %v982_v41 = vld [vmem:[#allocation13 + $0x28] sm:$0xff]  ;;  %v980_v43 = vld [vmem:[#allocation13 + $0x18] sm:$0xff]  ;;  %v977_v52 = vld [vmem:[#allocation13] sm:$0xff] }
  0x38   :  { %v998_v45 = vld [vmem:[%s1329_s6] ss:$0 sm:$0xff]  ;;  %v978_v51 = vld [vmem:[#allocation13 + $0x8] sm:$0xff] }
  0x39   :  { %414 = vmatpush.bf16.msra.mxu2 %v947_v58  ;;  %v999_v53 = vld [vmem:[%s1331_s8] ss:$0 sm:$0xff] }
  0x3a   :  { %253 = vmatpush.bf16.msra.mxu0 %v716_v48  ;;  %427 = vmatpush.bf16.msra.mxu3 %v955_v59  ;;  %v1000_v59 = vld [vmem:[%s1333_s10] ss:$0 sm:$0xff] }
  0x3b   :  { %266 = vmatpush.bf16.msra.mxu1 %v720_v49 }
  0x3d   :  { %415 = vmatpush.bf16.msra.mxu2 %v946_v61 }
  0x3e   :  { %254 = vmatpush.bf16.msra.mxu0 %v708_v56  ;;  %428 = vmatpush.bf16.msra.mxu3 %v954_v62 }
  0x3f   :  { %267 = vmatpush.bf16.msra.mxu1 %v712_v57 }
  0x41   :  { %255 = vmatmul.bf16.vlgmr.msra.gmra.mxu0 %v144_v60  ;;  %416 = vmatpush.bf16.msra.mxu2 %v945_v63 }
  0x42   :  { %268 = vmatmul.bf16.vlgmr.msra.gmra.mxu1 %v144_v60  ;;  %429 = vmatpush.bf16.msra.mxu3 %v953_v0 }
  0x43   :  { %505 = vmatpush.bf16.msrb.mxu0 %v968_v1  ;;  %588 = vmatpush.bf16.msrb.mxu1 %v976_v22 }
  0x45   :  { %671 = vmatpush.bf16.msrb.mxu2 %v984_v39 }
  0x47   :  { %506 = vmatpush.bf16.msrb.mxu0 %v967_v2  ;;  %589 = vmatpush.bf16.msrb.mxu1 %v975_v23 }
  0x49   :  { %672 = vmatpush.bf16.msrb.mxu2 %v983_v40 }
  0x4b   :  { %507 = vmatpush.bf16.msrb.mxu0 %v966_v3  ;;  %590 = vmatpush.bf16.msrb.mxu1 %v974_v24 }
  0x4d   :  { %673 = vmatpush.bf16.msrb.mxu2 %v982_v41 }
  0x4f   :  { %508 = vmatpush.bf16.msrb.mxu0 %v965_v4  ;;  %591 = vmatpush.bf16.msrb.mxu1 %v973_v25 }
  0x51   :  { %674 = vmatpush.bf16.msrb.mxu2 %v981_v42 }
  0x53   :  { %509 = vmatpush.bf16.msrb.mxu0 %v964_v5  ;;  %592 = vmatpush.bf16.msrb.mxu1 %v972_v26 }
  0x55   :  { %675 = vmatpush.bf16.msrb.mxu2 %v980_v43 }
  0x57   :  { %510 = vmatpush.bf16.msrb.mxu0 %v963_v7  ;;  %593 = vmatpush.bf16.msrb.mxu1 %v971_v27 }
  0x59   :  { %676 = vmatpush.bf16.msrb.mxu2 %v979_v44 }
  0x5b   :  { %511 = vmatpush.bf16.msrb.mxu0 %v962_v20  ;;  %594 = vmatpush.bf16.msrb.mxu1 %v970_v37 }
  0x5d   :  { %677 = vmatpush.bf16.msrb.mxu2 %v978_v51 }
  0x5f   :  { %512 = vmatpush.bf16.msrb.mxu0 %v961_v21  ;;  %595 = vmatpush.bf16.msrb.mxu1 %v969_v38 }
  0x61   :  { %678 = vmatpush.bf16.msrb.mxu2 %v977_v52 }
  0xbe   :  { %v256_v10 = vpop.f32.mrf.mxu0 }
  0xbf   :  { %v257_v11 = vadd.f32 %v256_v10, %v163_v8  ;;  %v269_v12 = vpop.f32.mrf.mxu1 }
  0xc0   :  { %v270_v13 = vadd.f32 %v269_v12, %v164_v9 }
  0xc1   :  { %v273_v14 = vmax.f32 %v257_v11, 0.0 }
  0xc2   :  { %v274_v15 = vmax.f32 %v270_v13, 0.0 }
  0xc3   :  { %v275_v16 = vpack.c.bf16 %v273_v14, %v273_v14 }
  0xc4   :  { %v276_v17 = vpack.c.bf16 %v274_v15, %v274_v15 }
  0xc5   :  { %417 = vmatmul.bf16.vlgmr.msra.gmra.mxu2 %v275_v16 }
  0xc6   :  { %430 = vmatmul.bf16.vlgmr.msra.gmra.mxu3 %v276_v17  ;;  %v258_v18 = vpop.f32.mrf.mxu0 }
  0xc7   :  { %v271_v19 = vpop.f32.mrf.mxu1 }
 0x148   :  { %v418_v29 = vpop.f32.mrf.mxu2 }
 0x149   :  { %v419_v30 = vadd.f32 %v997_v28, %v418_v29  ;;  %v431_v31 = vpop.f32.mrf.mxu3 }
 0x14b   :  { %v432_v32 = vadd.f32 %v431_v31, %v419_v30 }
 0x14d   :  { %v435_v33 = vmax.f32 %v432_v32, 0.0 }
 0x14f   :  { %v436_v34 = vpack.c.bf16 %v435_v33, %v435_v33 }
 0x150   :  { %v420_v35 = vpop.f32.mrf.mxu2 }
 0x151   :  { %v433_v36 = vpop.f32.mrf.mxu3  ;;  %513 = vmatmul.bf16.vlgmr.msrb.gmra.mxu0 %v436_v34 }
 0x1ce   :  { %v514_v46 = vpop.f32.mrf.mxu0 }
 0x1cf   :  { %v515_v47 = vadd.f32 %v998_v45, %v514_v46 }
 0x1d1   :  { %v518_v48 = vmax.f32 %v515_v47, 0.0 }
 0x1d3   :  { %v519_v49 = vpack.c.bf16 %v518_v48, %v518_v48 }
 0x1d5   :  { %596 = vmatmul.bf16.vlgmr.msrb.gmra.mxu1 %v519_v49 }
 0x1d6   :  { %v516_v50 = vpop.f32.mrf.mxu0 }
 0x252   :  { %v597_v54 = vpop.f32.mrf.mxu1 }
 0x253   :  { %v598_v55 = vadd.f32 %v999_v53, %v597_v54 }
 0x255   :  { %v601_v56 = vmax.f32 %v598_v55, 0.0 }
 0x257   :  { %v602_v57 = vpack.c.bf16 %v601_v56, %v601_v56 }
 0x259   :  { %679 = vmatmul.bf16.vlgmr.msrb.gmra.mxu2 %v602_v57 }
 0x25a   :  { %v599_v58 = vpop.f32.mrf.mxu1 }
 0x2dc   :  { %v680_v60 = vpop.f32.mrf.mxu2 }
 0x2dd   :  { %v681_v61 = vadd.f32 %v1000_v59, %v680_v60 }
 0x2df   :  { %684 = vst [vmem:[#allocation14] sm:$0xff] %v681_v61 }
 0x2e0   :  { %695 = dma.vmem_to_hbm [thread:$0]  %s691_s16, 128, %s693_s19, [#allocation4]  }
 0x2e4   :  { %v682_v62 = vpop.f32.mrf.mxu2 }
 0x2e5   :  { %1201 = dma.done.wait [#allocation4], 128  }
 0x2e6   :  { %1202 = vsyncadd [#allocation4], 4294967168 }
 0x2e7   :  { %700 = vsyncpa [#allocation3], 1 }
 0x2e8   :  { %701 = vsyncpa [#allocation6], 1 }
 0x2e9   :  { %702 = vsyncpa [#allocation9], 1 }
 0x2ea   :  { %703 = vsyncpa [#allocation12], 1 }
 0x2eb   :  { %704 = vsyncpa [#allocation4], 1 }

</bundles_post_ra>
